<compile_context>
chip_gen: v7x
topology: tpu7x:2x2x1
jax: 0.10.0
libtpu: 0.0.40
codegen_flags: <defaults>
</compile_context>

<pallas_src>
import jax
import jax.numpy as jnp
from jax.experimental import pallas as pl
from jax.experimental.pallas import tpu as pltpu


def _focus_conv_kernel(x_ref, w_ref, b_ref, o_ref):
    # x_ref: [1, K, TILE_P]  space-to-depth features for TILE_P output pixels (lanes)
    # w_ref: [C2, K]         1x1 conv weight with folded BN scale (VMEM-resident)
    # b_ref: [C2, 1]         folded BN bias (f32, broadcast over lanes)
    # o_ref: [1, C2, TILE_P] output pixels (lane-dense store)
    x = x_ref[0]                                              # [K, TILE_P]
    w = w_ref[...]                                            # [C2, K]
    y = jnp.dot(w, x, preferred_element_type=jnp.float32)     # MXU: [C2, TILE_P]
    y = y + b_ref[...]                                        # BatchNorm (folded)
    y = y * pl.reciprocal(1.0 + jnp.exp(-y), approx=True)     # SiLU (exp + rcp on EUP)
    o_ref[0] = y.astype(o_ref.dtype)


def _pick_tile_p(P, K, C2, itemsize, *, max_tile=16 * 1024,
                 vmem_budget=20 * 1024 * 1024):
    """Largest lane-dense pixel tile whose double-buffered working set fits VMEM."""
    if P <= 512:
        return P                                   # single block, full extent
    per_pixel = 2 * (K + C2) * itemsize            # in + out, double-buffered
    t = vmem_budget // per_pixel
    t = max(128, min(max_tile, (t // 128) * 128))  # lane-dense multiple of 128
    return min(t, P)


def focus_forward(x, weight, bn_gamma, bn_beta, bn_mean, bn_var, eps=1e-5):
    """Focus.forward (eval-mode BN).  x: [B, C1, H, W] NCHW, weight: [C2, 4*C1]."""
    B, C1, H, W = x.shape
    C2 = weight.shape[0]
    Ho, Wo = H // 2, W // 2
    K = 4 * C1
    P = Ho * Wo

    # --- Focus space-to-depth (matches torch slicing / cat order). ---
    # TODO(synk): the stride-2 column (lane-granularity) deinterleave cannot be
    #             expressed as a rectangular BlockSpec/DMA tile, so it stays as one
    #             fused XLA copy pass (read N + write N); the channels-first slab it
    #             produces needs no further transpose before or after the kernel.
    cat1 = x[..., ::2, ::2]
    cat2 = x[..., 1::2, ::2]
    cat3 = x[..., ::2, 1::2]
    cat4 = x[..., 1::2, 1::2]
    xc = jnp.concatenate((cat1, cat2, cat3, cat4), axis=1)      # [B, K, Ho, Wo]
    xt = xc.reshape(B, K, P)                                    # free reshape (contiguous)

    # --- Fold BatchNorm (running stats) into the 1x1 conv weight / bias. ---
    scale = (bn_gamma.astype(jnp.float32) /
             jnp.sqrt(bn_var.astype(jnp.float32) + eps))                   # [C2]
    bias = bn_beta.astype(jnp.float32) - bn_mean.astype(jnp.float32) * scale
    w_s = (weight.astype(jnp.float32) * scale[:, None]).astype(x.dtype)    # [C2, K]
    bias_col = bias.reshape(C2, 1)                                         # [C2, 1] f32

    itemsize = jnp.dtype(x.dtype).itemsize
    tile_p = _pick_tile_p(P, K, C2, itemsize)
    grid = (B, pl.cdiv(P, tile_p))

    cost = pl.CostEstimate(
        flops=2 * B * C2 * K * P,
        transcendentals=B * C2 * P,
        bytes_accessed=(B * K * P + B * C2 * P) * itemsize
                       + w_s.size * itemsize + bias_col.size * 4,
    )

    out = pl.pallas_call(
        _focus_conv_kernel,
        out_shape=jax.ShapeDtypeStruct((B, C2, P), x.dtype),
        grid_spec=pltpu.PrefetchScalarGridSpec(
            num_scalar_prefetch=0,
            grid=grid,
            in_specs=[
                pl.BlockSpec((1, K, tile_p), lambda b, j: (b, 0, j)),   # pipelined pixels
                pl.BlockSpec((C2, K), lambda b, j: (0, 0)),             # resident weight
                pl.BlockSpec((C2, 1), lambda b, j: (0, 0)),             # resident bias
            ],
            out_specs=pl.BlockSpec((1, C2, tile_p), lambda b, j: (b, 0, j)),
        ),
        compiler_params=pltpu.CompilerParams(
            dimension_semantics=("parallel", "parallel"),
            vmem_limit_bytes=32 * 1024 * 1024,
        ),
        cost_estimate=cost,
    )(xt, w_s, bias_col)

    return out.reshape(B, C2, Ho, Wo)       # already NCHW, free reshape


def _reference(x, weight, bn_gamma, bn_beta, bn_mean, bn_var, eps=1e-5):
    """Pure-JAX reference of Focus.forward (eval-mode BN)."""
    cat = jnp.concatenate((x[..., ::2, ::2], x[..., 1::2, ::2],
                           x[..., ::2, 1::2], x[..., 1::2, 1::2]), axis=1)
    y = jnp.einsum('bchw,oc->bohw', cat, weight)
    scale = bn_gamma / jnp.sqrt(bn_var + eps)
    y = y * scale[None, :, None, None] + (bn_beta - bn_mean * scale)[None, :, None, None]
    return y * jax.nn.sigmoid(y)


if __name__ == "__main__":
    key = jax.random.PRNGKey(0)
    k_x, k_w, k_g, k_b, k_m, k_v = jax.random.split(key, 6)

    B, C1, H, W = 2, 4, 16, 16
    C2 = 8

    x = jax.random.normal(k_x, (B, C1, H, W), dtype=jnp.float32)

    # Synthetic parameters (shapes from Conv(c1*4, c2, k=1, bias=False) + BN(c2)).
    weight = jax.random.normal(k_w, (C2, 4 * C1), dtype=jnp.float32) * 0.1
    bn_gamma = 1.0 + 0.1 * jax.random.normal(k_g, (C2,), dtype=jnp.float32)
    bn_beta = 0.1 * jax.random.normal(k_b, (C2,), dtype=jnp.float32)
    bn_mean = 0.1 * jax.random.normal(k_m, (C2,), dtype=jnp.float32)
    bn_var = jnp.abs(jax.random.normal(k_v, (C2,), dtype=jnp.float32)) + 0.5

    out = focus_forward(x, weight, bn_gamma, bn_beta, bn_mean, bn_var)
    out = jax.block_until_ready(out)

    ref = _reference(x, weight, bn_gamma, bn_beta, bn_mean, bn_var)
    assert out.shape == (B, C2, H // 2, W // 2), out.shape
    # Tolerance accounts for the EUP approximate-reciprocal SiLU; real layout/order
    # bugs would produce O(0.1-1) errors.
    assert jnp.allclose(out, ref, atol=5e-3, rtol=5e-3), float(jnp.max(jnp.abs(out - ref)))

    print("KERNEL_OK")
</pallas_src>

<mosaic_0001>
module attributes {stable_mosaic.version = 11 : i64} {
  func.func @_focus_conv_kernel(%arg0: i32, %arg1: i32, %arg2: memref<1x16x64xf32, #tpu.memory_space<vmem>>, %arg3: memref<8x16xf32, #tpu.memory_space<vmem>>, %arg4: memref<8x1xf32, #tpu.memory_space<vmem>>, %arg5: memref<1x8x64xf32, #tpu.memory_space<vmem>>) attributes {dimension_semantics = [#tpu.dimension_semantics<parallel>, #tpu.dimension_semantics<parallel>], iteration_bounds = array<i64: 2, 1>, scalar_prefetch = 0 : i64, scratch_operands = 0 : i64, tpu.core_type = #tpu.core_type<tc>, window_params = [{transform_indices = @transform_0, window_bounds = array<i64: 1, 16, 64>}, {pipeline_mode = #tpu.pipeline_mode<synchronous>, transform_indices = @transform_1, window_bounds = array<i64: 8, 16>}, {pipeline_mode = #tpu.pipeline_mode<synchronous>, transform_indices = @transform_2, window_bounds = array<i64: 8, 1>}, {transform_indices = @transform_3, window_bounds = array<i64: 1, 8, 64>}]} {
    %c0 = arith.constant 0 : index
    %c0_0 = arith.constant 0 : index
    %c0_1 = arith.constant 0 : index
    %0 = vector.load %arg2[%c0, %c0_0, %c0_1] : memref<1x16x64xf32, #tpu.memory_space<vmem>>, vector<1x16x64xf32>
    %1 = vector.shape_cast %0 : vector<1x16x64xf32> to vector<16x64xf32>
    %c0_2 = arith.constant 0 : index
    %c0_3 = arith.constant 0 : index
    %2 = vector.load %arg3[%c0_2, %c0_3] : memref<8x16xf32, #tpu.memory_space<vmem>>, vector<8x16xf32>
    %cst = arith.constant dense<0.000000e+00> : vector<8x64xf32>
    %3 = tpu.matmul %2, %1, %cst {dimension_numbers = #tpu.dot_dimension_numbers<[1], [0], [0], [1], [0, 0, 1, 1], [], []>} : vector<8x16xf32>, vector<16x64xf32>, vector<8x64xf32> -> vector<8x64xf32>
    %c0_4 = arith.constant 0 : index
    %c0_5 = arith.constant 0 : index
    %4 = vector.load %arg4[%c0_4, %c0_5] : memref<8x1xf32, #tpu.memory_space<vmem>>, vector<8x1xf32>
    %5 = vector.broadcast %4 : vector<8x1xf32> to vector<8x64xf32>
    %6 = arith.addf %3, %5 : vector<8x64xf32>
    %cst_6 = arith.constant 0.000000e+00 : f32
    %7 = vector.broadcast %cst_6 : f32 to vector<8x64xf32>
    %8 = arith.subf %7, %6 : vector<8x64xf32>
    %9 = math.exp %8 : vector<8x64xf32>
    %cst_7 = arith.constant 1.000000e+00 : f32
    %10 = vector.broadcast %cst_7 : f32 to vector<8x64xf32>
    %11 = arith.addf %10, %9 : vector<8x64xf32>
    %12 = tpu.reciprocal %11 {approx = true} : vector<8x64xf32> -> vector<8x64xf32>
    %13 = arith.mulf %6, %12 : vector<8x64xf32>
    %c0_8 = arith.constant 0 : index
    %c0_9 = arith.constant 0 : index
    %c0_10 = arith.constant 0 : index
    %14 = vector.load %arg5[%c0_8, %c0_9, %c0_10] : memref<1x8x64xf32, #tpu.memory_space<vmem>>, vector<1x8x64xf32>
    %15 = vector.shape_cast %14 : vector<1x8x64xf32> to vector<8x64xf32>
    %16 = vector.shape_cast %13 : vector<8x64xf32> to vector<1x8x64xf32>
    tpu.vector_store %arg5[%c0_8, %c0_9, %c0_10], %16 {strides = array<i32>} : memref<1x8x64xf32, #tpu.memory_space<vmem>>, vector<1x8x64xf32>,
    return
  }
  func.func @transform_0(%arg0: i32, %arg1: i32) -> (i32, i32, i32) {
    %c0_i32 = arith.constant 0 : i32
    %c0_i32_0 = arith.constant 0 : i32
    return %arg0, %c0_i32, %arg1 : i32, i32, i32
  }
  func.func @transform_1(%arg0: i32, %arg1: i32) -> (i32, i32) {
    %c0_i32 = arith.constant 0 : i32
    %c0_i32_0 = arith.constant 0 : i32
    %c0_i32_1 = arith.constant 0 : i32
    return %c0_i32, %c0_i32_0 : i32, i32
  }
  func.func @transform_2(%arg0: i32, %arg1: i32) -> (i32, i32) {
    %c0_i32 = arith.constant 0 : i32
    %c0_i32_0 = arith.constant 0 : i32
    %c0_i32_1 = arith.constant 0 : i32
    return %c0_i32, %c0_i32_0 : i32, i32
  }
  func.func @transform_3(%arg0: i32, %arg1: i32) -> (i32, i32, i32) {
    %c0_i32 = arith.constant 0 : i32
    %c0_i32_0 = arith.constant 0 : i32
    return %arg0, %c0_i32, %arg1 : i32, i32, i32
  }
}

</mosaic_0001>

<bundles_post_ra>
// kernel: tpu_custom_call.1
= control target key start
LH: loop header
LB: loop body
LE: loop exit
PB: predicated region body
PF: predicated region fallthrough
CT: control target
= control target key end

     0   :  { %8 = vsyncpa [#allocation3], 0  ;;  %s817_s0 = inlined_call_operand.hbm [shape: f32[2,16,64], index: 0, kind: input, shape index: {}]   ;;  %s818_s1 = inlined_call_operand.vmem [shape: f32[8,16], index: 1, kind: input, shape index: {}]   ;;  %s819_s2 = inlined_call_operand.vmem [shape: f32[8,1], index: 2, kind: input, shape index: {}]   ;;  %s820_s3 = inlined_call_operand.hbm [shape: f32[2,8,64], index: 3, kind: output, shape index: {}]  }
   0x1   :  { %10 = vsyncpa [#allocation3 + $0x1], 0 }
   0x2   :  { %11 = vsyncpa [#allocation4], 0 }
   0x3   :  { %13 = vsyncpa [#allocation4 + $0x1], 0  ;;  %s637_s12 = smov 0   ;;  %s639_s13 = smov 0  }
   0x4   :  { %s641_s14 = smov 0   ;;  %s643_s15 = smov 0  }
   0x5   :  { %s645_s16 = smov 0   ;;  %s647_s17 = smov 0  }
   0x6 LB: > { %s393_s18 = sadd.s32 4294967295, %s607_s17   ;;  %s394_s19 = sadd.s32 4294967294, %s607_s17   ;;  %s607_s17 = sphi %s647_s17, %s19_s17   ;;  %s603_s16 = sphi %s645_s16, %s835_s16   ;;  %s599_s15 = sphi %s643_s15, %s834_s15   ;;  %s595_s14 = sphi %s641_s14, %s833_s14   ;;  %s591_s13 = sphi %s639_s13, %s832_s13   ;;  %s587_s12 = sphi %s637_s12, %s831_s12  }
   0x7   : > { %s31_s20 = sadd.s32 1, %s603_s16  ;;  %s40_s21 = sadd.s32 1, %s595_s14 }
   0x8   : > { %p33_p0 = scmp.ge.s32.totalorder %s31_s20, 2  ;;  %p47_p1 = scmp.ne.s32.totalorder %s595_s14, %s591_s13 }
   0x9   : > { %p48_p2 = scmp.eq.s32.totalorder %s607_s17, 0  ;;  %p53_p3 = scmp.ne.s32.totalorder %s591_s13, %s587_s12 }
   0xa   : > { %s837_s20 = smov (%p33_p0, %s31_s20), 0  ;;  %p54_p5 = scmp.eq.s32.totalorder %s393_s18, 0 }
   0xb   : > { %p678_p4 = por %p48_p2, %p47_p1  ;;  %s35_s23 = ssub.s32 %s603_s16, %s837_s20 }
   0xc   : > { %p121_p6 = scmp.eq.s32.totalorder %s393_s18, 1  ;;  %p38_p7 = scmp.eq.s32.totalorder %s35_s23, 0 }
   0xd   : > { %p684_p8 = por %p54_p5, %p53_p3  ;;  %p127_p10 = scmp.eq.s32.totalorder %s394_s19, 1 }
   0xe   : > { %p688_p9 = por %p121_p6, %p47_p1  ;;  %p434_p13 = scmp.lt.s32.totalorder %s607_s17, 2 }
   0xf   : > { %s693_s26 = scalar_select %p38_p7, %s595_s14, %s40_s21  }
  0x10   : > { %s824_s25 = scalar_select %p688_p9, 1, 0 }
  0x11   : > { %p695_p11 = por %p127_p10, %p53_p3  ;;  %s153_s28 = sand.u32 1, %s595_s14  }
  0x12   : > { %s397_s29 = sshll.u32 %s153_s28, 4  ;;  %s408_s30 = sshll.u32 %s603_s16, 8 }
  0x13   : > { %s825_s27 = scalar_select %p695_p11, 1, 0 }
  0x14   : > { %s706_s6 = scalar_lea.hbm %s817_s0, %s408_s30  ;;  %s157_s7 = scalar_lea.vmem [#allocation2], %s397_s29 }
  0x15   : > { %s165_s8 = sshll.u32 %s157_s7, 4  ;;  %p712_p0 = pnand %p434_p13, %p678_p4  ;;  %s708_s8 = int_to_ptr.vmem [resolvable:$true] %s165_s8 }
  0x16   : > { %s717_s10 = scalar_lea.sflag [#allocation3], %s153_s28  ;;  %s495_s11 = scalar_lea.hbm %s706_s6, 256 }
  0x17   : > { %p496_p2 = scmp.ne.s32.totalorder %s706_s6, %s495_s11  ;;  %p497_p3 = pneg %p712_p0 }
  0x18   : > { %s500_s21 = scalar_lea.hbm %s817_s0, 512  ;;  %p501_p4 = scmp.lt.u32.totalorder %s706_s6, %s817_s0 }
  0x19   : > { %p498_p5 = pnand %p497_p3, %p496_p2  ;;  %p502_p7 = scmp.lt.u32.totalorder %s500_s21, %s495_s11 }
  0x1a   : > { %p504_p13 = scmp.lt.u32.totalorder %s495_s11, %s706_s6 }
  0x1b   : > { %p499_p6 = pneg %p498_p5  ;;  %p503_p10 = por %p502_p7, %p501_p4 }
  0x1d   : > { %p505_p12 = por %p504_p13, %p503_p10 }
  0x1f   : > { %p506_p1 = pnand %p505_p12, %p499_p6 }
  0x21   : > { %509 = shalt.err (!%p506_p1)
}
  0x22   : > { %s510_s28 = scalar_lea.vmem %s708_s8, 256  ;;  %s609_s29 = smov [#allocation2]  }
  0x23   : > { %p511_p2 = scmp.ne.s32.totalorder %s708_s8, %s510_s28  ;;  %s515_s30 = sshll.u32 %s609_s29, 4  ;;  %s516_s30 = int_to_ptr.vmem [resolvable:$false] %s515_s30 }
  0x24   : > { %s517_s4 = scalar_lea.vmem %s516_s30, 512  ;;  %p518_p9 = scmp.lt.s32.totalorder %s708_s8, %s516_s30 }
  0x25   : > { %p513_p5 = pnand %p511_p2, %p497_p3  ;;  %p519_p4 = scmp.lt.s32.totalorder %s517_s4, %s510_s28 }
  0x27   : > { %p514_p11 = pneg %p513_p5  ;;  %p520_p7 = por %p519_p4, %p518_p9 }
  0x29   : > { %p521_p10 = pnand %p520_p7, %p514_p11 }
  0x2b   : > { %524 = shalt.err (!%p521_p10)
}
  0x2c   : > { %s610_s5 = smov 128   ;;  %s611_s7 = smov 8  }
  0x2d   : > { %429 = dma.hbm_to_vmem [thread:$0]  (!%p712_p0), %s706_s6, 256, %s708_s8, %s717_s10, %s610_s5, %s610_s5, %s611_s7  }
  0x2e   : > { %p173_p12 = scmp.lt.s32.totalorder %s607_s17, 3  ;;  %p827_p1 = scmp.ge.s32.totalorder %s607_s17, 1 }
  0x30   : > { %p174_p3 = pnand %p827_p1, %p173_p12 }
  0x31   : > { %s749_s11 = sand.u32 (!%p174_p3), 1, %s591_s13  }
  0x32   : > { %177 = sbr.rel (%p174_p3) target bundleno = 323 (0x143), region = 32  ;;  %s401_s18 = sshll.u32 (!%p174_p3), %s749_s11, 4 }
  0x33   : > { %s180_s19 = scalar_lea.sflag (!%p174_p3), [#allocation3], %s749_s11  ;;  %s183_s21 = scalar_lea.vmem (!%p174_p3), [#allocation2], %s401_s18 }
  0x39   : > { %578 = dma.done.wait (%p684_p8), %s180_s19, 256  }
  0x3a   : > { %580 = vsyncadd (%p684_p8), %s180_s19, 4294967040  ;;  %v612_v0 = vmov 0.0|0.0   ;;  %vm613_vm0 = vmmov 0   ;;  %v614_v1 = vmov 0.0   ;;  %v615_v2 = vmov 0   ;;  %v206_v3 = vld [vmem:[%s183_s21] sm:$0xff] }
  0x3b   : > { %419 = vmatprep.subr.bf16.mxu0 %v612_v0  ;;  %416 = vmatprep.mubr.msk.f32.mxu0 %vm613_vm0, %v614_v1  ;;  %v207_v4 = vld [vmem:[%s183_s21 + $0x8] sm:$0xff]  ;;  %v209_v6 = vld [vmem:[%s819_s2] sm:$0xff]  ;;  %vm215_vm1 = vcmask 130048   ;;  %s402_s10 = sshll.u32 %s749_s11, 3  ;;  %s405_s22 = sshll.u32 %s599_s15, 7  ;;  %vm295_vm2 = vcmask 523264  }
  0x3c   : > { %490 = vset.pattern.permute.xlu0 %v615_v2  ;;  %v420_v5 = vpack.c.bf16 %v207_v4, %v206_v3  ;;  %v208_v7 = vld [vmem:[%s818_s1] sm:$0xff]  ;;  %s205_s23 = scalar_lea.vmem [#allocation5], %s402_s10  ;;  %s768_s4 = scalar_lea.hbm %s820_s3, %s405_s22 }
  0x3d   : > { %212 = vperm.xlu0 %490, %v209_v6   ;;  %s312_s28 = sshll.u32 %s205_s23, 4  ;;  %s298_s5 = scalar_lea.sflag [#allocation4], %s749_s11  ;;  %s770_s28 = int_to_ptr.vmem [resolvable:$true] %s312_s28 }
  0x3e   : > { %421 = vmatpush3.bf16.msra.mxu0 %v420_v5  ;;  %s525_s7 = scalar_lea.vmem %s770_s28, 128  ;;  %p828_p9 = scmp.ne.s32.totalorder %s824_s25, 0 }
  0x3f   : > { %p526_p8 = scmp.ne.s32.totalorder %s770_s28, %s525_s7  ;;  %s616_s15 = smov [#allocation5]  }
  0x40   : > { %s529_s18 = sshll.u32 %s616_s15, 4  ;;  %s530_s18 = int_to_ptr.vmem [resolvable:$false] %s529_s18 }
  0x41   : > { %417 = vmatmul.mubr.msk.f32.vlgmr.msra.gmra.mrb[0].mxu0 %vm215_vm1, %v208_v7  ;;  %p527_p11 = pnand %p526_p8, %p828_p9  ;;  %s531_s19 = scalar_lea.vmem %s530_s18, 256 }
  0x42   : > { %p532_p6 = scmp.lt.s32.totalorder %s770_s28, %s530_s18  ;;  %p533_p13 = scmp.lt.s32.totalorder %s531_s19, %s525_s7 }
  0x43   : > { %p528_p0 = pneg %p527_p11 }
  0x44   : > { %p534_p2 = por %p533_p13, %p532_p6 }
  0x46   : > { %p535_p5 = pnand %p534_p2, %p528_p0 }
  0xbc   : > { %v213_v8 = vpop.permute.xlu0 %212 }
 0x114   : > { %v285_v9 = vpop.f32.mrb[0].mxu0 }
 0x115   : > { %v286_v10 = vadd.f32 %v285_v9, %v213_v8  ;;  %v418_v11 = vpop.f32.mrb[1].mxu0 }
 0x117   : > { %v289_v12 = vsub.f32 0.0, %v286_v10 }
 0x119   : > { %v290_v13 = vmul.f32 1.442695, %v289_v12 }
 0x11b   : > { %491 = vpow2.f32 %v290_v13 }
 0x125   : > { %v492_v14 = vpop.eup %491 }
 0x126   : > { %v292_v15 = vadd.f32 1.0, %v492_v14 }
 0x128   : > { %493 = vrcp.f32 %v292_v15 }
 0x132   : > { %v494_v16 = vpop.eup %493 }
 0x133   : > { %v294_v17 = vmul.f32 %v494_v16, %v286_v10 }
 0x135   : > { %296 = vst.msk [vmem:[%s205_s23] sm:$0xff] %vm295_vm2, %v294_v17 }
 0x136   : > { %538 = shalt.err (!%p535_p5)
}
 0x137   : > { %s539_s11 = scalar_lea.hbm %s768_s4, 128  ;;  %s543_s8 = scalar_lea.hbm %s820_s3, 256 }
 0x138   : > { %p540_p4 = scmp.ne.s32.totalorder %s768_s4, %s539_s11  ;;  %p544_p12 = scmp.lt.u32.totalorder %s768_s4, %s820_s3 }
 0x139   : > { %p545_p1 = scmp.lt.u32.totalorder %s543_s8, %s539_s11  ;;  %p547_p8 = scmp.lt.u32.totalorder %s539_s11, %s768_s4 }
 0x13a   : > { %p541_p7 = pnand %p540_p4, %p828_p9 }
 0x13b   : > { %p546_p3 = por %p545_p1, %p544_p12 }
 0x13c   : > { %p542_p10 = pneg %p541_p7 }
 0x13d   : > { %p548_p11 = por %p547_p8, %p546_p3 }
 0x13f   : > { %p549_p0 = pnand %p548_p11, %p542_p10 }
 0x141   : > { %552 = shalt.err (!%p549_p0)
}
 0x142   : > { %424 = dma.vmem_to_hbm [thread:$0]  (%p828_p9), %s770_s28, 128, %s768_s4, %s298_s5  }
 0x143 PF: > { %s324_s10 = sand.u32 1, %s587_s12   ;;  %p829_p6 = scmp.ne.s32.totalorder %s825_s27, 0 }
 0x144   : > { %p830_p13 = scmp.ge.s32.totalorder %s607_s17, 2  ;;  %s325_s22 = scalar_lea.sflag [#allocation4], %s324_s10 }
 0x146   : > { %p431_p2 = pnand %p830_p13, %p829_p6 }
 0x148   : > { %582 = dma.done.wait (!%p431_p2), %s325_s22, 128  }
 0x149   : > { %584 = vsyncadd (!%p431_p2), %s325_s22, 4294967168  ;;  %s19_s17 = sadd.s32 1, %s607_s17   ;;  %s831_s12 = smov %s591_s13 }
 0x14a   : > { %p16_p5 = scmp.ge.s32.totalorder %s19_s17, 4   ;;  %s832_s13 = smov %s595_s14 }
 0x14b   : > { %s833_s14 = smov %s693_s26  ;;  %s834_s15 = smov %s603_s16 }
 0x14c   : > { %s835_s16 = smov %s837_s20  ;;  %18 = sbr.rel (!%p16_p5) target bundleno = 6 (0x6), region = 77 }
 0x153   :  { %330 = vsyncpa [#allocation3], 1 }
 0x154   :  { %332 = vsyncpa [#allocation3 + $0x1], 1 }
 0x155   :  { %333 = vsyncpa [#allocation4], 1 }
 0x156   :  { %335 = vsyncpa [#allocation4 + $0x1], 1 }

</bundles_post_ra>
